<compile_context>
chip_gen: v5e
topology: v5e:2x2
jax: 0.10.0
libtpu: 0.0.40
codegen_flags: <defaults>
</compile_context>

<pallas_src>
import jax
import jax.numpy as jnp
from jax import lax
from jax.experimental import pallas as pl
from jax.experimental.pallas import tpu as pltpu

NUM_CLASSES = 10
K_IN = 784
K_PAD = 896          # 7 * 128: lane-aligned fc1 contraction dim
H1 = 256
H2 = 128
OUT_PAD = 128        # fc3 output rows padded 10 -> 128 for a lane-dense output tile


def _mlp_loss_kernel(x_ref, w1_ref, w2_ref, w3_ref, gt_ref, out_ref):
    # x_ref:  (tb, 896) bf16        w1_ref: (256, 896) bf16  (PyTorch (out,in), K padded)
    # w2_ref: (128, 256) bf16       w3_ref: (128, 128) bf16  (fc3 rows zero-padded 10->128)
    # gt_ref: (tb, 1) i32           out_ref: (tb, 128) f32  (cols 0..9 logits, col 10 loss)
    dn = (((1,), (1,)), ((), ()))   # contract shared "in" axis: (M,K)·(N,K) -> (M,N)

    # fc1 + relu  (bf16 operands, f32 accumulation on the MXU)
    h1 = lax.dot_general(x_ref[...], w1_ref[...], dn,
                         preferred_element_type=jnp.float32)
    h1 = jnp.maximum(h1, 0.0)

    # fc2 + sigmoid
    h2 = lax.dot_general(h1.astype(jnp.bfloat16), w2_ref[...], dn,
                         preferred_element_type=jnp.float32)
    h2 = jax.nn.sigmoid(h2)

    # fc3 -> lane-dense (tb, 128) logits; columns >= 10 are exactly zero (padded w3 rows)
    logits = lax.dot_general(h2.astype(jnp.bfloat16), w3_ref[...], dn,
                             preferred_element_type=jnp.float32)

    # PyTorch semantics: loss_i = logsumexp(softmax(logits_i)) - softmax(logits_i)[gt_i]
    # (softmax applied twice, faithfully mirroring the reference module).  All math is
    # f32 on full 128-wide vregs; the 10 real classes are selected with lane masks.
    col = lax.broadcasted_iota(jnp.int32, logits.shape, 1)
    valid = col < NUM_CLASSES
    neg = jnp.float32(-1e30)

    lm = jnp.where(valid, logits, neg)
    m1 = jnp.max(lm, axis=1, keepdims=True)
    e1 = jnp.exp(lm - m1)                                   # padded lanes underflow to 0
    # softmax divide -> EUP approximate reciprocal (VALU slot stays free)
    p = e1 * pl.reciprocal(jnp.sum(e1, axis=1, keepdims=True), approx=True)

    # padded lanes of p are exactly 0 < 1/10 <= true max, so a plain max is safe
    m2 = jnp.max(p, axis=1, keepdims=True)
    e2 = jnp.where(valid, jnp.exp(p - m2), 0.0)
    lse = jnp.log(jnp.sum(e2, axis=1, keepdims=True)) + m2

    onehot = (col == gt_ref[...]).astype(jnp.float32)       # gt broadcasts (tb,1)->(tb,128)
    picked = jnp.sum(p * onehot, axis=1, keepdims=True)
    row_loss = lse - picked                                  # (tb, 1)

    # Single lane-dense store: cols 0..9 = logits, col 10 = per-row loss partial.
    out_ref[...] = jnp.where(col == NUM_CLASSES, row_loss, logits)


def prepare_params(w1, w2, w3):
    """One-time parameter prep (outside the step): keep the PyTorch (out, in) layout
    (no per-call transposes), zero-pad fc1's contraction dim 784 -> 896 and fc3's
    output dim 10 -> 128, and cast everything to bf16 MXU operands."""
    w1p = jnp.zeros((H1, K_PAD), jnp.bfloat16).at[:, :K_IN].set(w1.astype(jnp.bfloat16))
    w2p = w2.astype(jnp.bfloat16)
    w3p = jnp.zeros((OUT_PAD, H2), jnp.bfloat16).at[:NUM_CLASSES, :].set(
        w3.astype(jnp.bfloat16))
    return w1p, w2p, w3p


def _pick_batch_tile(B, block_b):
    """Largest batch tile that divides B, is a multiple of 8 (unless it equals B),
    is <= block_b, and leaves >= 2 grid tiles when B >= 16 so the 'parallel' batch
    axis can shard across both v7x TensorCores."""
    if B <= 8 or (B <= block_b and B < 16):
        return B
    cap = min(block_b, B // 2 if B >= 16 else B)
    best = None
    t = 8
    while t <= cap:
        if B % t == 0:
            best = t
        t += 8
    return best if best is not None else B


def net_forward(x_nchw, gt, w1p, w2p, w3p, *, block_b=1024):
    """x_nchw: (B,1,28,28) float, gt: (B,) int, weights from prepare_params."""
    B = x_nchw.shape[0]
    # x.view(-1, 784) -> bf16 MXU operand, K padded 784 -> 896 (one fused XLA op).
    x2d = jnp.pad(x_nchw.reshape(B, K_IN).astype(jnp.bfloat16),
                  ((0, 0), (0, K_PAD - K_IN)))
    gt2d = gt.astype(jnp.int32).reshape(B, 1)

    tb = _pick_batch_tile(B, block_b)
    assert B % tb == 0, "batch tile must divide B"
    grid = (B // tb,)

    out = pl.pallas_call(
        _mlp_loss_kernel,
        grid=grid,
        out_shape=jax.ShapeDtypeStruct((B, OUT_PAD), jnp.float32),
        in_specs=[
            pl.BlockSpec((tb, K_PAD), lambda i: (i, 0)),     # x: tiled over batch
            pl.BlockSpec((H1, K_PAD), lambda i: (0, 0)),     # w1: VMEM-resident
            pl.BlockSpec((H2, H1), lambda i: (0, 0)),        # w2: VMEM-resident
            pl.BlockSpec((OUT_PAD, H2), lambda i: (0, 0)),   # w3 (padded): VMEM-resident
            pl.BlockSpec((tb, 1), lambda i: (i, 0)),         # labels
        ],
        out_specs=pl.BlockSpec((tb, OUT_PAD), lambda i: (i, 0)),  # lane-dense output
        compiler_params=pltpu.CompilerParams(
            dimension_semantics=("parallel",),               # megacore-shardable on v7x
        ),
    )(x2d, w1p, w2p, w3p, gt2d)

    logits = out[:, :NUM_CLASSES]
    loss = jnp.sum(out[:, NUM_CLASSES])
    return logits, loss


def _reference(x_nchw, gt, w1, w2, w3):
    B = x_nchw.shape[0]
    x = x_nchw.reshape(B, K_IN)
    h1 = jnp.maximum(x @ w1.T, 0.0)
    h2 = jax.nn.sigmoid(h1 @ w2.T)
    logits = h2 @ w3.T
    p = jax.nn.softmax(logits, axis=1)
    logp = jax.nn.log_softmax(p, axis=1)
    loss = -jnp.sum(logp[jnp.arange(B), gt])
    return logits, loss


if __name__ == "__main__":
    key = jax.random.PRNGKey(0)
    kx, kg, k1, k2, k3 = jax.random.split(key, 5)

    B = 8
    x = jax.random.normal(kx, (B, 1, 28, 28), dtype=jnp.float32)   # NCHW, MNIST-like
    gt = jax.random.randint(kg, (B,), 0, NUM_CLASSES, dtype=jnp.int32)

    # Deterministic Linear(bias=False) init: uniform(-1/sqrt(in), 1/sqrt(in)), (out, in)
    def init_linear(k, out_f, in_f):
        bound = 1.0 / (in_f ** 0.5)
        return jax.random.uniform(k, (out_f, in_f), jnp.float32, -bound, bound)

    w1 = init_linear(k1, 256, 784)
    w2 = init_linear(k2, 128, 256)
    w3 = init_linear(k3, 10, 128)

    # One-time prep (no per-call transposes / pads / casts in the hot path).
    w1p, w2p, w3p = prepare_params(w1, w2, w3)

    fwd = jax.jit(net_forward)
    logits, loss = jax.block_until_ready(fwd(x, gt, w1p, w2p, w3p))

    ref_logits, ref_loss = _reference(x, gt, w1, w2, w3)
    # bf16 MXU operands + approx softmax reciprocal vs. a pure-f32 reference:
    # tolerances loosened accordingly (loss/softmax math itself stays f32).
    assert jnp.allclose(logits, ref_logits, atol=2e-2, rtol=2e-2), \
        float(jnp.max(jnp.abs(logits - ref_logits)))
    assert jnp.allclose(loss, ref_loss, atol=5e-2, rtol=1e-2), \
        (float(loss), float(ref_loss))

    print("KERNEL_OK")
</pallas_src>

<mosaic_0001>
module attributes {stable_mosaic.version = 11 : i64} {
  func.func @_mlp_loss_kernel(%arg0: i32, %arg1: memref<8x896xbf16, #tpu.memory_space<vmem>>, %arg2: memref<256x896xbf16, #tpu.memory_space<vmem>>, %arg3: memref<128x256xbf16, #tpu.memory_space<vmem>>, %arg4: memref<128x128xbf16, #tpu.memory_space<vmem>>, %arg5: memref<8x1xi32, #tpu.memory_space<vmem>>, %arg6: memref<8x128xf32, #tpu.memory_space<vmem>>) attributes {dimension_semantics = [#tpu.dimension_semantics<parallel>], iteration_bounds = array<i64: 1>, scalar_prefetch = 0 : i64, scratch_operands = 0 : i64, tpu.core_type = #tpu.core_type<tc>, window_params = [{transform_indices = @transform_0, window_bounds = array<i64: 8, 896>}, {pipeline_mode = #tpu.pipeline_mode<synchronous>, transform_indices = @transform_1, window_bounds = array<i64: 256, 896>}, {pipeline_mode = #tpu.pipeline_mode<synchronous>, transform_indices = @transform_2, window_bounds = array<i64: 128, 256>}, {pipeline_mode = #tpu.pipeline_mode<synchronous>, transform_indices = @transform_3, window_bounds = array<i64: 128, 128>}, {transform_indices = @transform_4, window_bounds = array<i64: 8, 1>}, {transform_indices = @transform_5, window_bounds = array<i64: 8, 128>}]} {
    %c0 = arith.constant 0 : index
    %c0_0 = arith.constant 0 : index
    %0 = vector.load %arg1[%c0, %c0_0] : memref<8x896xbf16, #tpu.memory_space<vmem>>, vector<8x896xbf16>
    %c0_1 = arith.constant 0 : index
    %c0_2 = arith.constant 0 : index
    %1 = vector.load %arg2[%c0_1, %c0_2] : memref<256x896xbf16, #tpu.memory_space<vmem>>, vector<256x896xbf16>
    %cst = arith.constant dense<0.000000e+00> : vector<8x256xf32>
    %2 = tpu.matmul %0, %1, %cst {dimension_numbers = #tpu.dot_dimension_numbers<[1], [1], [0], [0], [0, 0, 1, 0], [], []>} : vector<8x896xbf16>, vector<256x896xbf16>, vector<8x256xf32> -> vector<8x256xf32>
    %cst_3 = arith.constant 0.000000e+00 : f32
    %3 = vector.broadcast %cst_3 : f32 to vector<8x256xf32>
    %4 = arith.maximumf %2, %3 : vector<8x256xf32>
    %5 = arith.truncf %4 : vector<8x256xf32> to vector<8x256xbf16>
    %c0_4 = arith.constant 0 : index
    %c0_5 = arith.constant 0 : index
    %6 = vector.load %arg3[%c0_4, %c0_5] : memref<128x256xbf16, #tpu.memory_space<vmem>>, vector<128x256xbf16>
    %cst_6 = arith.constant dense<0.000000e+00> : vector<8x128xf32>
    %7 = tpu.matmul %5, %6, %cst_6 {dimension_numbers = #tpu.dot_dimension_numbers<[1], [1], [0], [0], [0, 0, 1, 0], [], []>} : vector<8x256xbf16>, vector<128x256xbf16>, vector<8x128xf32> -> vector<8x128xf32>
    %8 = arith.negf %7 : vector<8x128xf32>
    %9 = math.exp %8 : vector<8x128xf32>
    %cst_7 = arith.constant 1.000000e+00 : f32
    %10 = vector.broadcast %cst_7 : f32 to vector<8x128xf32>
    %11 = arith.addf %10, %9 : vector<8x128xf32>
    %12 = arith.divf %10, %11 : vector<8x128xf32>
    %13 = arith.truncf %12 : vector<8x128xf32> to vector<8x128xbf16>
    %c0_8 = arith.constant 0 : index
    %c0_9 = arith.constant 0 : index
    %14 = vector.load %arg4[%c0_8, %c0_9] : memref<128x128xbf16, #tpu.memory_space<vmem>>, vector<128x128xbf16>
    %cst_10 = arith.constant dense<0.000000e+00> : vector<8x128xf32>
    %15 = tpu.matmul %13, %14, %cst_10 {dimension_numbers = #tpu.dot_dimension_numbers<[1], [1], [0], [0], [0, 0, 1, 0], [], []>} : vector<8x128xbf16>, vector<128x128xbf16>, vector<8x128xf32> -> vector<8x128xf32>
    %16 = tpu.iota {dimensions = array<i32: 1>} : vector<8x128xi32>
    %c10_i32 = arith.constant 10 : i32
    %17 = vector.broadcast %c10_i32 : i32 to vector<8x128xi32>
    %18 = arith.cmpi slt, %16, %17 : vector<8x128xi32>
    %cst_11 = arith.constant -1.000000e+30 : f32
    %19 = vector.broadcast %cst_11 : f32 to vector<8x128xf32>
    %20 = arith.select %18, %15, %19 : vector<8x128xi1>, vector<8x128xf32>
    %cst_12 = arith.constant dense<0xFF800000> : vector<8xf32>
    %21 = vector.multi_reduction <maximumf>, %20, %cst_12 [1] : vector<8x128xf32> to vector<8xf32>
    %22 = vector.shape_cast %21 : vector<8xf32> to vector<8x1xf32>
    %23 = vector.broadcast %22 : vector<8x1xf32> to vector<8x128xf32>
    %24 = arith.subf %20, %23 : vector<8x128xf32>
    %25 = math.exp %24 : vector<8x128xf32>
    %cst_13 = arith.constant dense<0.000000e+00> : vector<8xf32>
    %26 = vector.multi_reduction <add>, %25, %cst_13 [1] : vector<8x128xf32> to vector<8xf32>
    %27 = vector.shape_cast %26 : vector<8xf32> to vector<8x1xf32>
    %28 = tpu.reciprocal %27 {approx = true} : vector<8x1xf32> -> vector<8x1xf32>
    %29 = vector.broadcast %28 : vector<8x1xf32> to vector<8x128xf32>
    %30 = arith.mulf %25, %29 : vector<8x128xf32>
    %cst_14 = arith.constant dense<0xFF800000> : vector<8xf32>
    %31 = vector.multi_reduction <maximumf>, %30, %cst_14 [1] : vector<8x128xf32> to vector<8xf32>
    %32 = vector.shape_cast %31 : vector<8xf32> to vector<8x1xf32>
    %33 = vector.broadcast %32 : vector<8x1xf32> to vector<8x128xf32>
    %34 = arith.subf %30, %33 : vector<8x128xf32>
    %35 = math.exp %34 : vector<8x128xf32>
    %cst_15 = arith.constant 0.000000e+00 : f32
    %36 = vector.broadcast %cst_15 : f32 to vector<8x128xf32>
    %37 = arith.select %18, %35, %36 : vector<8x128xi1>, vector<8x128xf32>
    %cst_16 = arith.constant dense<0.000000e+00> : vector<8xf32>
    %38 = vector.multi_reduction <add>, %37, %cst_16 [1] : vector<8x128xf32> to vector<8xf32>
    %39 = vector.shape_cast %38 : vector<8xf32> to vector<8x1xf32>
    %40 = math.log %39 : vector<8x1xf32>
    %41 = arith.addf %40, %32 : vector<8x1xf32>
    %c0_17 = arith.constant 0 : index
    %c0_18 = arith.constant 0 : index
    %42 = vector.load %arg5[%c0_17, %c0_18] : memref<8x1xi32, #tpu.memory_space<vmem>>, vector<8x1xi32>
    %43 = vector.broadcast %42 : vector<8x1xi32> to vector<8x128xi32>
    %44 = arith.cmpi eq, %16, %43 : vector<8x128xi32>
    %45 = arith.extui %44 : vector<8x128xi1> to vector<8x128xi32>
    %46 = arith.sitofp %45 : vector<8x128xi32> to vector<8x128xf32>
    %47 = arith.mulf %30, %46 : vector<8x128xf32>
    %cst_19 = arith.constant dense<0.000000e+00> : vector<8xf32>
    %48 = vector.multi_reduction <add>, %47, %cst_19 [1] : vector<8x128xf32> to vector<8xf32>
    %49 = vector.shape_cast %48 : vector<8xf32> to vector<8x1xf32>
    %50 = arith.subf %41, %49 : vector<8x1xf32>
    %c10_i32_20 = arith.constant 10 : i32
    %51 = vector.broadcast %c10_i32_20 : i32 to vector<8x128xi32>
    %52 = arith.cmpi eq, %16, %51 : vector<8x128xi32>
    %53 = vector.shape_cast %50 : vector<8x1xf32> to vector<8x1xf32>
    %54 = vector.broadcast %53 : vector<8x1xf32> to vector<8x128xf32>
    %55 = arith.select %52, %54, %15 : vector<8x128xi1>, vector<8x128xf32>
    %c0_21 = arith.constant 0 : index
    %c0_22 = arith.constant 0 : index
    %56 = vector.load %arg6[%c0_21, %c0_22] : memref<8x128xf32, #tpu.memory_space<vmem>>, vector<8x128xf32>
    tpu.vector_store %arg6[%c0_21, %c0_22], %55 {strides = array<i32>} : memref<8x128xf32, #tpu.memory_space<vmem>>, vector<8x128xf32>,
    return
  }
  func.func @transform_0(%arg0: i32) -> (i32, i32) {
    %c0_i32 = arith.constant 0 : i32
    %c0_i32_0 = arith.constant 0 : i32
    return %arg0, %c0_i32 : i32, i32
  }
  func.func @transform_1(%arg0: i32) -> (i32, i32) {
    %c0_i32 = arith.constant 0 : i32
    %c0_i32_0 = arith.constant 0 : i32
    %c0_i32_1 = arith.constant 0 : i32
    return %c0_i32, %c0_i32_0 : i32, i32
  }
  func.func @transform_2(%arg0: i32) -> (i32, i32) {
    %c0_i32 = arith.constant 0 : i32
    %c0_i32_0 = arith.constant 0 : i32
    %c0_i32_1 = arith.constant 0 : i32
    return %c0_i32, %c0_i32_0 : i32, i32
  }
  func.func @transform_3(%arg0: i32) -> (i32, i32) {
    %c0_i32 = arith.constant 0 : i32
    %c0_i32_0 = arith.constant 0 : i32
    %c0_i32_1 = arith.constant 0 : i32
    return %c0_i32, %c0_i32_0 : i32, i32
  }
  func.func @transform_4(%arg0: i32) -> (i32, i32) {
    %c0_i32 = arith.constant 0 : i32
    %c0_i32_0 = arith.constant 0 : i32
    return %arg0, %c0_i32 : i32, i32
  }
  func.func @transform_5(%arg0: i32) -> (i32, i32) {
    %c0_i32 = arith.constant 0 : i32
    %c0_i32_0 = arith.constant 0 : i32
    return %arg0, %c0_i32 : i32, i32
  }
}

</mosaic_0001>

<bundles_post_ra>
// kernel: net_forward.1
= control target key start
LH: loop header
LB: loop body
LE: loop exit
PB: predicated region body
PF: predicated region fallthrough
CT: control target
= control target key end

     0   :  { %10 = vsyncpa [#allocation3], 0  ;;  %s1944_s21 = smov [#allocation2]   ;;  %s1945_s23 = smov 448   ;;  %s2153_s0 = inlined_call_operand.vmem [shape: bf16[8,896], index: 0, kind: input, shape index: {}]   ;;  %s2154_s1 = inlined_call_operand.hbm [shape: bf16[256,896], index: 1, kind: input, shape index: {}]   ;;  %s2155_s2 = inlined_call_operand.vmem [shape: bf16[128,256], index: 2, kind: input, shape index: {}]   ;;  %s2156_s3 = inlined_call_operand.vmem [shape: bf16[128,128], index: 3, kind: input, shape index: {}]   ;;  %s2157_s4 = inlined_call_operand.vmem [shape: s32[8,1], index: 4, kind: input, shape index: {}]   ;;  %s2158_s5 = inlined_call_operand.vmem [shape: f32[8,128], index: 5, kind: output, shape index: {}]  }
   0x1   :  { %s17_s20 = sshll.u32 %s2154_s1, 4  ;;  %s19_s22 = sshll.u32 %s1944_s21, 4  ;;  %s18_s20 = int_to_ptr.hbm [resolvable:$true] %s17_s20  ;;  %s20_s22 = int_to_ptr.vmem [resolvable:$true] %s19_s22 }
   0x2   :  { %s1946_s24 = smov 28  }
   0x3   :  { %25 = dma.hbm_to_vmem [thread:$0]  %s18_s20, 14336, %s20_s22, [#allocation3], %s1945_s23, %s1945_s23, %s1946_s24  }
   0x4   :  { %1942 = dma.done.wait [#allocation3], 14336  }
   0x5   :  { %1943 = vsyncadd [#allocation3], 4294952960  ;;  %v1415_v0 = vld [vmem:[#allocation2 + $0x188] sm:$0xf]  ;;  %v1815_v1 = vld [vmem:[#allocation2 + $0x1a0] sm:$0xf0] }
   0x6   :  { %v1812_v2 = vld [vmem:[#allocation2 + $0x18c] sm:$0xf]  ;;  %v1416_v3 = vor.u32 %v1815_v1, %v1415_v0  ;;  %v1417_v4 = vld [vmem:[#allocation2 + $0x1a4] sm:$0xf0]  ;;  %v1423_v5 = vld [vmem:[#allocation2 + $0x190] sm:$0xf] }
   0x7   :  { %v1816_v6 = vld [vmem:[#allocation2 + $0x1a8] sm:$0xf0]  ;;  %v1420_v7 = vor.u32 %v1812_v2, %v1417_v4  ;;  %v1387_v9 = vld [vmem:[#allocation2 + $0x150] sm:$0xf]  ;;  %v1805_v11 = vld [vmem:[#allocation2 + $0x154] sm:$0xf] }
   0x8   :  { %v1424_v8 = vor.u32 %v1816_v6, %v1423_v5  ;;  %769 = vmatpush.bf16.xpose.msra.mxu0 %v1416_v3  ;;  %v1808_v10 = vld [vmem:[#allocation2 + $0x168] sm:$0xf0]  ;;  %v1389_v12 = vld [vmem:[#allocation2 + $0x16c] sm:$0xf0]  ;;  %v1395_v13 = vld [vmem:[#allocation2 + $0x158] sm:$0xf] }
   0x9   :  { %782 = vmatpush.bf16.xpose.msra.mxu1 %v1420_v7  ;;  %v1809_v14 = vld [vmem:[#allocation2 + $0x170] sm:$0xf0]  ;;  %v1388_v15 = vor.u32 %v1808_v10, %v1387_v9  ;;  %v1392_v16 = vor.u32 %v1805_v11, %v1389_v12  ;;  %v1425_v19 = vld [vmem:[#allocation2 + $0x1ac] sm:$0xf0]  ;;  %v1359_v21 = vld [vmem:[#allocation2 + $0x118] sm:$0xf] }
   0xa   :  { %795 = vmatpush.bf16.xpose.msra.mxu2 %v1424_v8  ;;  %v1396_v17 = vor.u32 %v1809_v14, %v1395_v13  ;;  %v1813_v18 = vld [vmem:[#allocation2 + $0x194] sm:$0xf]  ;;  %v1798_v23 = vld [vmem:[#allocation2 + $0x11c] sm:$0xf]  ;;  %v1361_v24 = vld [vmem:[#allocation2 + $0x134] sm:$0xf0] }
   0xb   :  { %v1428_v20 = vor.u32 %v1813_v18, %v1425_v19  ;;  %v1801_v22 = vld [vmem:[#allocation2 + $0x130] sm:$0xf0]  ;;  %v1367_v25 = vld [vmem:[#allocation2 + $0x120] sm:$0xf]  ;;  %v1802_v26 = vld [vmem:[#allocation2 + $0x138] sm:$0xf0]  ;;  %v1364_v30 = vor.u32 %v1798_v23, %v1361_v24 }
   0xc   :  { %v1806_v27 = vld [vmem:[#allocation2 + $0x15c] sm:$0xf]  ;;  %v1397_v28 = vld [vmem:[#allocation2 + $0x174] sm:$0xf0]  ;;  %v1360_v29 = vor.u32 %v1801_v22, %v1359_v21  ;;  %v1368_v31 = vor.u32 %v1802_v26, %v1367_v25  ;;  %v1331_v33 = vld [vmem:[#allocation2 + $0xe0] sm:$0xf] }
   0xd   :  { %808 = vmatpush.bf16.xpose.msra.mxu3 %v1428_v20  ;;  %v1400_v32 = vor.u32 %v1806_v27, %v1397_v28  ;;  %v1794_v34 = vld [vmem:[#allocation2 + $0xf8] sm:$0xf0]  ;;  %v1791_v35 = vld [vmem:[#allocation2 + $0xe4] sm:$0xf]  ;;  %v1333_v36 = vld [vmem:[#allocation2 + $0xfc] sm:$0xf0] }
   0xe   :  { %v1339_v37 = vld [vmem:[#allocation2 + $0xe8] sm:$0xf]  ;;  %v1795_v38 = vld [vmem:[#allocation2 + $0x100] sm:$0xf0]  ;;  %v1369_v40 = vld [vmem:[#allocation2 + $0x13c] sm:$0xf0]  ;;  %v1332_v41 = vor.u32 %v1794_v34, %v1331_v33  ;;  %v1336_v42 = vor.u32 %v1791_v35, %v1333_v36 }
   0xf   :  { %v1799_v39 = vld [vmem:[#allocation2 + $0x124] sm:$0xf]  ;;  %v1340_v43 = vor.u32 %v1795_v38, %v1339_v37  ;;  %v1303_v45 = vld [vmem:[#allocation2 + $0xa8] sm:$0xf]  ;;  %v1784_v47 = vld [vmem:[#allocation2 + $0xac] sm:$0xf] }
  0x10   :  { %770 = vmatpush.bf16.xpose.msra.mxu0 %v1388_v15  ;;  %v1372_v44 = vor.u32 %v1799_v39, %v1369_v40  ;;  %v1787_v46 = vld [vmem:[#allocation2 + $0xc0] sm:$0xf0]  ;;  %v1305_v48 = vld [vmem:[#allocation2 + $0xc4] sm:$0xf0]  ;;  %v1311_v49 = vld [vmem:[#allocation2 + $0xb0] sm:$0xf] }
  0x11   :  { %783 = vmatpush.bf16.xpose.msra.mxu1 %v1392_v16  ;;  %v1788_v50 = vld [vmem:[#allocation2 + $0xc8] sm:$0xf0]  ;;  %v1341_v52 = vld [vmem:[#allocation2 + $0x104] sm:$0xf0]  ;;  %v1304_v53 = vor.u32 %v1787_v46, %v1303_v45  ;;  %v1308_v54 = vor.u32 %v1784_v47, %v1305_v48  ;;  %v1275_v57 = vld [vmem:[#allocation2 + $0x70] sm:$0xf] }
  0x12   :  { %796 = vmatpush.bf16.xpose.msra.mxu2 %v1396_v17  ;;  %v1792_v51 = vld [vmem:[#allocation2 + $0xec] sm:$0xf]  ;;  %v1312_v55 = vor.u32 %v1788_v50, %v1311_v49  ;;  %v1777_v59 = vld [vmem:[#allocation2 + $0x74] sm:$0xf]  ;;  %v1277_v60 = vld [vmem:[#allocation2 + $0x8c] sm:$0xf0] }
  0x13   :  { %v1344_v56 = vor.u32 %v1792_v51, %v1341_v52  ;;  %v1780_v58 = vld [vmem:[#allocation2 + $0x88] sm:$0xf0]  ;;  %v1283_v61 = vld [vmem:[#allocation2 + $0x78] sm:$0xf]  ;;  %v1781_v62 = vld [vmem:[#allocation2 + $0x90] sm:$0xf0]  ;;  %v1280_v2 = vor.u32 %v1777_v59, %v1277_v60 }
  0x14   :  { %v1785_v63 = vld [vmem:[#allocation2 + $0xb4] sm:$0xf]  ;;  %v1313_v0 = vld [vmem:[#allocation2 + $0xcc] sm:$0xf0]  ;;  %v1276_v1 = vor.u32 %v1780_v58, %v1275_v57  ;;  %v1284_v3 = vor.u32 %v1781_v62, %v1283_v61  ;;  %v1247_v5 = vld [vmem:[#allocation2 + $0x38] sm:$0xf] }
  0x15   :  { %809 = vmatpush.bf16.xpose.msra.mxu3 %v1400_v32  ;;  %v1316_v4 = vor.u32 %v1785_v63, %v1313_v0  ;;  %v1773_v6 = vld [vmem:[#allocation2 + $0x50] sm:$0xf0]  ;;  %v1770_v7 = vld [vmem:[#allocation2 + $0x3c] sm:$0xf]  ;;  %v1249_v8 = vld [vmem:[#allocation2 + $0x54] sm:$0xf0] }
  0x16   :  { %v1255_v9 = vld [vmem:[#allocation2 + $0x40] sm:$0xf]  ;;  %v1774_v10 = vld [vmem:[#allocation2 + $0x58] sm:$0xf0]  ;;  %v1285_v12 = vld [vmem:[#allocation2 + $0x94] sm:$0xf0]  ;;  %v1248_v13 = vor.u32 %v1773_v6, %v1247_v5  ;;  %v1252_v14 = vor.u32 %v1770_v7, %v1249_v8 }
  0x17   :  { %v1778_v11 = vld [vmem:[#allocation2 + $0x7c] sm:$0xf]  ;;  %v1256_v15 = vor.u32 %v1774_v10, %v1255_v9  ;;  %v1219_v17 = vld [vmem:[#allocation2] sm:$0xf]  ;;  %v1763_v19 = vld [vmem:[#allocation2 + $0x4] sm:$0xf] }
  0x18   :  { %771 = vmatpush.bf16.xpose.msra.mxu0 %v1360_v29  ;;  %v1288_v16 = vor.u32 %v1778_v11, %v1285_v12  ;;  %v1766_v18 = vld [vmem:[#allocation2 + $0x18] sm:$0xf0]  ;;  %v1221_v20 = vld [vmem:[#allocation2 + $0x1c] sm:$0xf0]  ;;  %v1227_v21 = vld [vmem:[#allocation2 + $0x8] sm:$0xf] }
  0x19   :  { %784 = vmatpush.bf16.xpose.msra.mxu1 %v1364_v30  ;;  %v1767_v22 = vld [vmem:[#allocation2 + $0x20] sm:$0xf0]  ;;  %v1431_v23 = vld [vmem:[#allocation2 + $0x198] sm:$0xf]  ;;  %v1817_v24 = vld [vmem:[#allocation2 + $0x1b0] sm:$0xf0]  ;;  %v1220_v28 = vor.u32 %v1766_v18, %v1219_v17  ;;  %v1224_v32 = vor.u32 %v1763_v19, %v1221_v20 }
  0x1a   :  { %797 = vmatpush.bf16.xpose.msra.mxu2 %v1368_v31  ;;  %v1814_v25 = vld [vmem:[#allocation2 + $0x19c] sm:$0xf]  ;;  %v1433_v26 = vld [vmem:[#allocation2 + $0x1b4] sm:$0xf0]  ;;  %v1439_v27 = vld [vmem:[#allocation2 + $0x1a0] sm:$0xf]  ;;  %v1228_v33 = vor.u32 %v1767_v22, %v1227_v21  ;;  %v1432_v34 = vor.u32 %v1817_v24, %v1431_v23 }
  0x1b   :  { %v1818_v29 = vld [vmem:[#allocation2 + $0x1b8] sm:$0xf0]  ;;  %v1771_v30 = vld [vmem:[#allocation2 + $0x44] sm:$0xf]  ;;  %v1257_v31 = vld [vmem:[#allocation2 + $0x5c] sm:$0xf0]  ;;  %v1436_v35 = vor.u32 %v1814_v25, %v1433_v26 }
  0x1c   :  { %v1440_v36 = vor.u32 %v1818_v29, %v1439_v27  ;;  %v1260_v37 = vor.u32 %v1771_v30, %v1257_v31  ;;  %v1403_v38 = vld [vmem:[#allocation2 + $0x160] sm:$0xf]  ;;  %v1810_v39 = vld [vmem:[#allocation2 + $0x178] sm:$0xf0]  ;;  %v1807_v40 = vld [vmem:[#allocation2 + $0x164] sm:$0xf] }
  0x1d   :  { %810 = vmatpush.bf16.xpose.msra.mxu3 %v1372_v44  ;;  %v1764_v44 = vld [vmem:[#allocation2 + $0xc] sm:$0xf]  ;;  %v1229_v45 = vld [vmem:[#allocation2 + $0x24] sm:$0xf0]  ;;  %v1871_v47 = vld [vmem:[#allocation2 + $0x360] sm:$0xf0]  ;;  %v1404_v48 = vor.u32 %v1810_v39, %v1403_v38 }
  0x1e   :  { %v1639_v46 = vld [vmem:[#allocation2 + $0x348] sm:$0xf]  ;;  %v1232_v51 = vor.u32 %v1764_v44, %v1229_v45  ;;  %v36_v57 = vld [vmem:[%s2153_s0] sm:$0xff]  ;;  %v1383_v59 = vld [vmem:[#allocation2 + $0x130] sm:$0xf] }
  0x1f   :  { %v1640_v52 = vor.u32 %v1871_v47, %v1639_v46  ;;  %v37_v58 = vld [vmem:[%s2153_s0 + $0x8] sm:$0xff]  ;;  %v172_v61 = vunpack.c.l.b16 %v36_v57  ;;  %v1611_v63 = vld [vmem:[#allocation2 + $0x310] sm:$0xf]  ;;  %v173_v7 = vunpack.c.h.b16 %v36_v57  ;;  %v1793_v11 = vld [vmem:[#allocation2 + $0xf4] sm:$0xf] }
  0x20   :  { %772 = vmatpush.bf16.xpose.msra.mxu0 %v1332_v41  ;;  %v1405_v41 = vld [vmem:[#allocation2 + $0x17c] sm:$0xf0]  ;;  %v1804_v60 = vld [vmem:[#allocation2 + $0x148] sm:$0xf0]  ;;  %v174_v62 = vunpack.c.l.b16 %v37_v58  ;;  %v1347_v8 = vld [vmem:[#allocation2 + $0xf0] sm:$0xf] }
  0x21   :  { %785 = vmatpush.bf16.xpose.msra.mxu1 %v1336_v42  ;;  %v1411_v42 = vld [vmem:[#allocation2 + $0x168] sm:$0xf]  ;;  %v1408_v49 = vor.u32 %v1807_v40, %v1405_v41  ;;  %v1864_v0 = vld [vmem:[#allocation2 + $0x328] sm:$0xf0]  ;;  %v1384_v5 = vor.u32 %v1804_v60, %v1383_v59  ;;  %v1994_v9 = vpack.c.b16 %v173_v7, %v173_v7  ;;  %v1349_v12 = vld [vmem:[#allocation2 + $0x10c] sm:$0xf0] }
  0x22   :  { %798 = vmatpush.bf16.xpose.msra.mxu2 %v1340_v43  ;;  %v1811_v43 = vld [vmem:[#allocation2 + $0x180] sm:$0xf0]  ;;  %v1612_v6 = vor.u32 %v1864_v0, %v1611_v63  ;;  %v1796_v10 = vld [vmem:[#allocation2 + $0x108] sm:$0xf0]  ;;  %v1583_v17 = vld [vmem:[#allocation2 + $0x2d8] sm:$0xf]  ;;  %v1352_v20 = vor.u32 %v1793_v11, %v1349_v12 }
  0x23   :  { %v1412_v50 = vor.u32 %v1811_v43, %v1411_v42  ;;  %v1857_v18 = vld [vmem:[#allocation2 + $0x2f0] sm:$0xf0]  ;;  %v1348_v19 = vor.u32 %v1796_v10, %v1347_v8  ;;  %v1319_v23 = vld [vmem:[#allocation2 + $0xb8] sm:$0xf]  ;;  %v1786_v25 = vld [vmem:[#allocation2 + $0xbc] sm:$0xf] }
  0x24   :  { %v1584_v22 = vor.u32 %v1857_v18, %v1583_v17  ;;  %v1789_v24 = vld [vmem:[#allocation2 + $0xd0] sm:$0xf0]  ;;  %v1321_v26 = vld [vmem:[#allocation2 + $0xd4] sm:$0xf0]  ;;  %v1327_v27 = vld [vmem:[#allocation2 + $0xc0] sm:$0xf] }
  0x25   :  { %811 = vmatpush.bf16.xpose.msra.mxu3 %v1344_v56  ;;  %v1377_v56 = vld [vmem:[#allocation2 + $0x144] sm:$0xf0]  ;;  %v1320_v29 = vor.u32 %v1789_v24, %v1319_v23  ;;  %v1324_v30 = vor.u32 %v1786_v25, %v1321_v26  ;;  %v1293_v38 = vld [vmem:[#allocation2 + $0x9c] sm:$0xf0]  ;;  %v1783_v40 = vld [vmem:[#allocation2 + $0xa0] sm:$0xf0] }
  0x26   :  { %v1299_v39 = vld [vmem:[#allocation2 + $0x88] sm:$0xf]  ;;  %v1843_v42 = vld [vmem:[#allocation2 + $0x280] sm:$0xf0]  ;;  %v1235_v59 = vld [vmem:[#allocation2 + $0x10] sm:$0xf] }
  0x27   :  { %v1527_v41 = vld [vmem:[#allocation2 + $0x268] sm:$0xf]  ;;  %v1300_v45 = vor.u32 %v1783_v40, %v1299_v39  ;;  %v1768_v60 = vld [vmem:[#allocation2 + $0x28] sm:$0xf0]  ;;  %v1243_v63 = vld [vmem:[#allocation2 + $0x18] sm:$0xf] }
  0x28   :  { %773 = vmatpush.bf16.xpose.msra.mxu0 %v1304_v53  ;;  %v1375_v53 = vld [vmem:[#allocation2 + $0x128] sm:$0xf]  ;;  %v1528_v46 = vor.u32 %v1843_v42, %v1527_v41  ;;  %v1769_v0 = vld [vmem:[#allocation2 + $0x30] sm:$0xf0]  ;;  %v1649_v8 = vld [vmem:[#allocation2 + $0x36c] sm:$0xf0]  ;;  %v1236_v10 = vor.u32 %v1768_v60, %v1235_v59 }
  0x29   :  { %786 = vmatpush.bf16.xpose.msra.mxu1 %v1308_v54  ;;  %v1803_v54 = vld [vmem:[#allocation2 + $0x140] sm:$0xf0]  ;;  %v1263_v47 = vld [vmem:[#allocation2 + $0x48] sm:$0xf]  ;;  %v1869_v7 = vld [vmem:[#allocation2 + $0x354] sm:$0xf] }
  0x2a   :  { %799 = vmatpush.bf16.xpose.msra.mxu2 %v1312_v55  ;;  %v1800_v55 = vld [vmem:[#allocation2 + $0x12c] sm:$0xf]  ;;  %v38_v12 = vld [vmem:[%s2153_s0 + $0x10] sm:$0xff]  ;;  %v39_v18 = vld [vmem:[%s2153_s0 + $0x18] sm:$0xf] }
  0x2b   :  { %v178_v24 = vunpack.c.l.b16 %v39_v18  ;;  %v1861_v25 = vld [vmem:[#allocation2 + $0x314] sm:$0xf]  ;;  %v1613_v26 = vld [vmem:[#allocation2 + $0x32c] sm:$0xf0]  ;;  %v1848_v59 = vld [vmem:[#allocation2 + $0x2ac] sm:$0xf] }
  0x2c   :  { %v1565_v60 = vld [vmem:[#allocation2 + $0x2c4] sm:$0xf0]  ;;  %v1833_v18 = vld [vmem:[#allocation2 + $0x234] sm:$0xf] }
  0x2d   :  { %812 = vmatpush.bf16.xpose.msra.mxu3 %v1316_v4  ;;  %v1990_v4 = vpack.c.b16 %v174_v62, %v174_v62  ;;  %v1237_v62 = vld [vmem:[#allocation2 + $0x2c] sm:$0xf0] }
  0x30   :  { %774 = vmatpush.bf16.xpose.msra.mxu0 %v1276_v1  ;;  %v1376_v1 = vor.u32 %v1803_v54, %v1375_v53  ;;  %v1499_v53 = vld [vmem:[#allocation2 + $0x230] sm:$0xf]  ;;  %v1836_v54 = vld [vmem:[#allocation2 + $0x248] sm:$0xf0] }
  0x31   :  { %787 = vmatpush.bf16.xpose.msra.mxu1 %v1280_v2  ;;  %v1380_v2 = vor.u32 %v1800_v55, %v1377_v56 }
  0x32   :  { %800 = vmatpush.bf16.xpose.msra.mxu2 %v1284_v3  ;;  %v1988_v3 = vpack.c.b16 %v172_v61, %v172_v61  ;;  %v1765_v61 = vld [vmem:[#allocation2 + $0x14] sm:$0xf] }
  0x33   :  { %v1240_v11 = vor.u32 %v1765_v61, %v1237_v62  ;;  %v1599_v62 = vld [vmem:[#allocation2 + $0x2e8] sm:$0xf] }
  0x35   :  { %813 = vmatpush.bf16.xpose.msra.mxu3 %v1288_v16 }
  0x38   :  { %775 = vmatpush.bf16.xpose.msra.mxu0 %v1248_v13  ;;  %v175_v13 = vunpack.c.h.b16 %v37_v58  ;;  %v1500_v58 = vor.u32 %v1836_v54, %v1499_v53 }
  0x39   :  { %788 = vmatpush.bf16.xpose.msra.mxu1 %v1252_v14  ;;  %v1355_v14 = vld [vmem:[#allocation2 + $0xf8] sm:$0xf] }
  0x3a   :  { %801 = vmatpush.bf16.xpose.msra.mxu2 %v1256_v15  ;;  %v1797_v15 = vld [vmem:[#allocation2 + $0x110] sm:$0xf0]  ;;  %v1997_v16 = vpack.c.b16 %v175_v13, %v175_v13  ;;  %v1471_v13 = vld [vmem:[#allocation2 + $0x1f8] sm:$0xf] }
  0x3b   :  { %v1356_v21 = vor.u32 %v1797_v15, %v1355_v14  ;;  %v1829_v14 = vld [vmem:[#allocation2 + $0x210] sm:$0xf0]  ;;  %v1244_v15 = vor.u32 %v1769_v0, %v1243_v63  ;;  %v1859_v63 = vld [vmem:[#allocation2 + $0x300] sm:$0xf0] }
  0x3c   :  { %v1472_v23 = vor.u32 %v1829_v14, %v1471_v13  ;;  %v1571_v13 = vld [vmem:[#allocation2 + $0x2b0] sm:$0xf] }
  0x3d   :  { %814 = vmatpush.bf16.xpose.msra.mxu3 %v1260_v37  ;;  %v1779_v37 = vld [vmem:[#allocation2 + $0x84] sm:$0xf] }
  0x3e   :  { %v1296_v44 = vor.u32 %v1779_v37, %v1293_v38  ;;  %v1655_v37 = vld [vmem:[#allocation2 + $0x358] sm:$0xf]  ;;  %v1873_v38 = vld [vmem:[#allocation2 + $0x370] sm:$0xf0] }
  0x3f   :  { %v1656_v42 = vor.u32 %v1873_v38, %v1655_v37  ;;  %v1827_v37 = vld [vmem:[#allocation2 + $0x204] sm:$0xf]  ;;  %v1481_v38 = vld [vmem:[#allocation2 + $0x21c] sm:$0xf0] }
  0x40   :  { %776 = vmatpush.bf16.xpose.msra.mxu0 %v1220_v28  ;;  %v1790_v28 = vld [vmem:[#allocation2 + $0xd8] sm:$0xf0] }
  0x41   :  { %789 = vmatpush.bf16.xpose.msra.mxu1 %v1224_v32  ;;  %v1328_v31 = vor.u32 %v1790_v28, %v1327_v27  ;;  %v1555_v32 = vld [vmem:[#allocation2 + $0x2a0] sm:$0xf]  ;;  %v1619_v27 = vld [vmem:[#allocation2 + $0x318] sm:$0xf] }
  0x42   :  { %802 = vmatpush.bf16.xpose.msra.mxu2 %v1228_v33  ;;  %v1850_v33 = vld [vmem:[#allocation2 + $0x2b8] sm:$0xf0] }
  0x45   :  { %815 = vmatpush.bf16.xpose.msra.mxu3 %v1232_v51  ;;  %v1271_v51 = vld [vmem:[#allocation2 + $0x50] sm:$0xf] }
  0x47   :  { %777 = vmatmul.bf16.vlgmr.msra.gmra.mxu0 %v1988_v3 }
  0x48   :  { %821 = vmatpush.bf16.xpose.msrb.mxu0 %v1432_v34  ;;  %790 = vmatmul.bf16.vlgmr.msra.gmra.mxu1 %v1994_v9  ;;  %v1556_v34 = vor.u32 %v1850_v33, %v1555_v32  ;;  %v1621_v32 = vld [vmem:[#allocation2 + $0x334] sm:$0xf0]  ;;  %v2010_v33 = vpack.c.b16 %v178_v24, %v178_v24 }
  0x49   :  { %834 = vmatpush.bf16.xpose.msrb.mxu1 %v1436_v35  ;;  %803 = vmatmul.bf16.vlgmr.msra.gmra.mxu2 %v1990_v4  ;;  %v1291_v35 = vld [vmem:[#allocation2 + $0x80] sm:$0xf] }
  0x4a   :  { %847 = vmatpush.bf16.xpose.msrb.mxu2 %v1440_v36  ;;  %v1782_v36 = vld [vmem:[#allocation2 + $0x98] sm:$0xf0] }
  0x4b   :  { %v1292_v43 = vor.u32 %v1782_v36, %v1291_v35  ;;  %v1822_v35 = vld [vmem:[#allocation2 + $0x1d8] sm:$0xf0]  ;;  %v1616_v36 = vor.u32 %v1861_v25, %v1613_v26  ;;  %v1543_v25 = vld [vmem:[#allocation2 + $0x278] sm:$0xf]  ;;  %v1845_v26 = vld [vmem:[#allocation2 + $0x290] sm:$0xf0] }
  0x4c   :  { %816 = vmatmul.bf16.vlgmr.msra.gmra.mxu3 %v1997_v16 }
  0x4d   :  { %860 = vmatpush.bf16.xpose.msrb.mxu3 %v1640_v52  ;;  %v1776_v52 = vld [vmem:[#allocation2 + $0x68] sm:$0xf0] }
  0x4e   :  { %v1272_v57 = vor.u32 %v1776_v52, %v1271_v51  ;;  %v1866_v51 = vld [vmem:[#allocation2 + $0x338] sm:$0xf0] }
  0x50   :  { %822 = vmatpush.bf16.xpose.msrb.mxu0 %v1404_v48  ;;  %v1775_v48 = vld [vmem:[#allocation2 + $0x60] sm:$0xf0] }
  0x51   :  { %835 = vmatpush.bf16.xpose.msrb.mxu1 %v1408_v49  ;;  %v1772_v49 = vld [vmem:[#allocation2 + $0x4c] sm:$0xf]  ;;  %v1264_v55 = vor.u32 %v1775_v48, %v1263_v47  ;;  %v1855_v47 = vld [vmem:[#allocation2 + $0x2e4] sm:$0xf]  ;;  %v1593_v48 = vld [vmem:[#allocation2 + $0x2fc] sm:$0xf0] }
  0x52   :  { %848 = vmatpush.bf16.xpose.msrb.mxu2 %v1412_v50  ;;  %v1265_v50 = vld [vmem:[#allocation2 + $0x64] sm:$0xf0]  ;;  %v1596_v53 = vor.u32 %v1855_v47, %v1593_v48  ;;  %v1823_v48 = vld [vmem:[#allocation2 + $0x1e0] sm:$0xf0] }
  0x53   :  { %v1268_v56 = vor.u32 %v1772_v49, %v1265_v50  ;;  %v1627_v50 = vld [vmem:[#allocation2 + $0x320] sm:$0xf]  ;;  %v1451_v47 = vld [vmem:[#allocation2 + $0x1c8] sm:$0xf] }
  0x54   :  { %v1628_v54 = vor.u32 %v1866_v51, %v1627_v50  ;;  %v1657_v50 = vld [vmem:[#allocation2 + $0x374] sm:$0xf0]  ;;  %v1663_v51 = vld [vmem:[#allocation2 + $0x360] sm:$0xf] }
  0x55   :  { %861 = vmatpush.bf16.xpose.msrb.mxu3 %v1612_v6  ;;  %v1872_v6 = vld [vmem:[#allocation2 + $0x368] sm:$0xf0] }
  0x58   :  { %823 = vmatpush.bf16.xpose.msrb.mxu0 %v1376_v1  ;;  %v1868_v1 = vld [vmem:[#allocation2 + $0x34c] sm:$0xf] }
  0x59   :  { %836 = vmatpush.bf16.xpose.msrb.mxu1 %v1380_v2  ;;  %v1641_v2 = vld [vmem:[#allocation2 + $0x364] sm:$0xf0] }
  0x5a   :  { %849 = vmatpush.bf16.xpose.msrb.mxu2 %v1384_v5  ;;  %v1647_v5 = vld [vmem:[#allocation2 + $0x350] sm:$0xf]  ;;  %v1644_v17 = vor.u32 %v1868_v1, %v1641_v2  ;;  %v1568_v1 = vor.u32 %v1848_v59, %v1565_v60  ;;  %v1600_v2 = vor.u32 %v1859_v63, %v1599_v62  ;;  %v1831_v59 = vld [vmem:[#allocation2 + $0x220] sm:$0xf0]  ;;  %v1452_v60 = vor.u32 %v1823_v48, %v1451_v47  ;;  %v1517_v47 = vld [vmem:[#allocation2 + $0x25c] sm:$0xf0] }
  0x5d   :  { %862 = vmatpush.bf16.xpose.msrb.mxu3 %v1584_v22  ;;  %v177_v22 = vunpack.c.h.b16 %v38_v12 }
  0x60   :  { %824 = vmatpush.bf16.xpose.msrb.mxu0 %v1348_v19  ;;  %v1648_v19 = vor.u32 %v1872_v6, %v1647_v5  ;;  %v1840_v5 = vld [vmem:[#allocation2 + $0x26c] sm:$0xf]  ;;  %v1529_v6 = vld [vmem:[#allocation2 + $0x284] sm:$0xf0] }
  0x61   :  { %837 = vmatpush.bf16.xpose.msrb.mxu1 %v1352_v20  ;;  %v1652_v20 = vor.u32 %v1869_v7, %v1649_v8  ;;  %v1535_v7 = vld [vmem:[#allocation2 + $0x270] sm:$0xf]  ;;  %v1844_v8 = vld [vmem:[#allocation2 + $0x288] sm:$0xf0] }
  0x62   :  { %850 = vmatpush.bf16.xpose.msrb.mxu2 %v1356_v21  ;;  %v176_v21 = vunpack.c.l.b16 %v38_v12  ;;  %v1532_v12 = vor.u32 %v1840_v5, %v1529_v6  ;;  %v1536_v14 = vor.u32 %v1844_v8, %v1535_v7  ;;  %v1629_v5 = vld [vmem:[#allocation2 + $0x33c] sm:$0xf0]  ;;  %v1635_v6 = vld [vmem:[#allocation2 + $0x328] sm:$0xf]  ;;  %v1867_v7 = vld [vmem:[#allocation2 + $0x340] sm:$0xf0] }
  0x63   :  { %v1715_v8 = vld [vmem:[%s2155_s2 + $0x60] sm:$0xf] }
  0x64   :  { %v2006_v28 = vpack.c.b16 %v176_v21, %v176_v21  ;;  %v1837_v21 = vld [vmem:[#allocation2 + $0x250] sm:$0xf0] }
  0x65   :  { %863 = vmatpush.bf16.xpose.msrb.mxu3 %v1556_v34  ;;  %v1443_v34 = vld [vmem:[#allocation2 + $0x1c0] sm:$0xf] }
  0x66   :  { %v1444_v41 = vor.u32 %v1822_v35, %v1443_v34  ;;  %v1473_v34 = vld [vmem:[#allocation2 + $0x214] sm:$0xf0]  ;;  %v1479_v35 = vld [vmem:[#allocation2 + $0x200] sm:$0xf] }
  0x68   :  { %825 = vmatpush.bf16.xpose.msrb.mxu0 %v1320_v29  ;;  %v2008_v29 = vpack.c.b16 %v177_v22, %v177_v22  ;;  %v1834_v22 = vld [vmem:[#allocation2 + $0x23c] sm:$0xf] }
  0x69   :  { %838 = vmatpush.bf16.xpose.msrb.mxu1 %v1324_v30  ;;  %v1865_v30 = vld [vmem:[#allocation2 + $0x330] sm:$0xf0] }
  0x6a   :  { %851 = vmatpush.bf16.xpose.msrb.mxu2 %v1328_v31  ;;  %v1862_v31 = vld [vmem:[#allocation2 + $0x31c] sm:$0xf]  ;;  %v1620_v39 = vor.u32 %v1865_v30, %v1619_v27 }
  0x6b   :  { %v1624_v40 = vor.u32 %v1862_v31, %v1621_v32  ;;  %v1544_v31 = vor.u32 %v1845_v26, %v1543_v25  ;;  %v1826_v32 = vld [vmem:[#allocation2 + $0x1fc] sm:$0xf]  ;;  %v1579_v25 = vld [vmem:[#allocation2 + $0x2b8] sm:$0xf]  ;;  %v1853_v26 = vld [vmem:[#allocation2 + $0x2d0] sm:$0xf0] }
  0x6d   :  { %864 = vmatpush.bf16.xpose.msrb.mxu3 %v1528_v46  ;;  %v1858_v46 = vld [vmem:[#allocation2 + $0x2f8] sm:$0xf0] }
  0x70   :  { %826 = vmatpush.bf16.xpose.msrb.mxu0 %v1292_v43  ;;  %v1854_v43 = vld [vmem:[#allocation2 + $0x2dc] sm:$0xf] }
  0x71   :  { %839 = vmatpush.bf16.xpose.msrb.mxu1 %v1296_v44  ;;  %v1585_v44 = vld [vmem:[#allocation2 + $0x2f4] sm:$0xf0] }
  0x72   :  { %852 = vmatpush.bf16.xpose.msrb.mxu2 %v1300_v45  ;;  %v1591_v45 = vld [vmem:[#allocation2 + $0x2e0] sm:$0xf]  ;;  %v1588_v49 = vor.u32 %v1854_v43, %v1585_v44  ;;  %v1484_v43 = vor.u32 %v1827_v37, %v1481_v38  ;;  %v1846_v38 = vld [vmem:[#allocation2 + $0x298] sm:$0xf0] }
  0x73   :  { %v1592_v52 = vor.u32 %v1858_v46, %v1591_v45  ;;  %v1819_v45 = vld [vmem:[#allocation2 + $0x1c4] sm:$0xf]  ;;  %v1445_v46 = vld [vmem:[#allocation2 + $0x1dc] sm:$0xf0] }
  0x75   :  { %865 = vmatpush.bf16.xpose.msrb.mxu3 %v1500_v58  ;;  %v1851_v58 = vld [vmem:[#allocation2 + $0x2c0] sm:$0xf0] }
  0x78   :  { %827 = vmatpush.bf16.xpose.msrb.mxu0 %v1264_v55  ;;  %v1847_v55 = vld [vmem:[#allocation2 + $0x2a4] sm:$0xf] }
  0x79   :  { %840 = vmatpush.bf16.xpose.msrb.mxu1 %v1268_v56  ;;  %v1557_v56 = vld [vmem:[#allocation2 + $0x2bc] sm:$0xf0] }
  0x7a   :  { %853 = vmatpush.bf16.xpose.msrb.mxu2 %v1272_v57  ;;  %v1563_v57 = vld [vmem:[#allocation2 + $0x2a8] sm:$0xf]  ;;  %v1560_v61 = vor.u32 %v1847_v55, %v1557_v56  ;;  %v1723_v55 = vld [vmem:[%s2155_s2 + $0x70] sm:$0xf]  ;;  %v1448_v56 = vor.u32 %v1819_v45, %v1445_v46  ;;  %v1835_v46 = vld [vmem:[#allocation2 + $0x244] sm:$0xf] }
  0x7b   :  { %v1564_v0 = vor.u32 %v1851_v58, %v1563_v57  ;;  %v1890_v57 = vld [vmem:[%s2155_s2 + $0x74] sm:$0xf0]  ;;  %v1487_v58 = vld [vmem:[#allocation2 + $0x208] sm:$0xf] }
  0x7d   :  { %866 = vmatpush.bf16.xpose.msrb.mxu3 %v1472_v23  ;;  %v1509_v23 = vld [vmem:[#allocation2 + $0x254] sm:$0xf0] }
  0x7e   :  { %v1512_v30 = vor.u32 %v1834_v22, %v1509_v23 }
  0x80   :  { %828 = vmatpush.bf16.xpose.msrb.mxu0 %v1236_v10  ;;  %v1841_v10 = vld [vmem:[#allocation2 + $0x274] sm:$0xf] }
  0x81   :  { %841 = vmatpush.bf16.xpose.msrb.mxu1 %v1240_v11  ;;  %v1537_v11 = vld [vmem:[#allocation2 + $0x28c] sm:$0xf0] }
  0x82   :  { %854 = vmatpush.bf16.xpose.msrb.mxu2 %v1244_v15  ;;  %v1540_v15 = vor.u32 %v1841_v10, %v1537_v11  ;;  %v1888_v10 = vld [vmem:[%s2155_s2 + $0x64] sm:$0xf0]  ;;  %v1459_v11 = vld [vmem:[#allocation2 + $0x1d0] sm:$0xf] }
  0x85   :  { %867 = vmatpush.bf16.xpose.msrb.mxu3 %v1444_v41  ;;  %v1838_v41 = vld [vmem:[#allocation2 + $0x258] sm:$0xf0] }
  0x87   :  { %829 = vmatmul.bf16.vlgmr.msrb.gmra.mxu0 %v2006_v28 }
  0x88   :  { %873 = vmatpush.bf16.xpose.msra.mxu0 %v1644_v17  ;;  %842 = vmatmul.bf16.vlgmr.msrb.gmra.mxu1 %v2008_v29 }
  0x89   :  { %886 = vmatpush.bf16.xpose.msra.mxu1 %v1648_v19  ;;  %855 = vmatmul.bf16.vlgmr.msrb.gmra.mxu2 %v2010_v33  ;;  %v1501_v19 = vld [vmem:[#allocation2 + $0x24c] sm:$0xf0] }
  0x8a   :  { %899 = vmatpush.bf16.xpose.msra.mxu2 %v1652_v20  ;;  %v1507_v20 = vld [vmem:[#allocation2 + $0x238] sm:$0xf]  ;;  %v1504_v24 = vor.u32 %v1833_v18, %v1501_v19  ;;  %v1601_v18 = vld [vmem:[#allocation2 + $0x304] sm:$0xf0]  ;;  %v1607_v19 = vld [vmem:[#allocation2 + $0x2f0] sm:$0xf] }
  0x8b   :  { %v1508_v27 = vor.u32 %v1837_v21, %v1507_v20  ;;  %v1860_v20 = vld [vmem:[#allocation2 + $0x308] sm:$0xf0]  ;;  %v1707_v21 = vld [vmem:[%s2155_s2 + $0x50] sm:$0xf] }
  0x8c   :  { %868 = vmatmul.bf16.vlgmr.msrb.gmra.mxu3 %v1988_v3  ;;  %v1852_v3 = vld [vmem:[#allocation2 + $0x2c8] sm:$0xf0] }
  0x8d   :  { %912 = vmatpush.bf16.xpose.msra.mxu3 %v1656_v42  ;;  %v1572_v17 = vor.u32 %v1852_v3, %v1571_v13  ;;  %v1636_v3 = vor.u32 %v1867_v7, %v1635_v6  ;;  %v1821_v7 = vld [vmem:[#allocation2 + $0x1d4] sm:$0xf] }
  0x90   :  { %874 = vmatpush.bf16.xpose.msra.mxu0 %v1616_v36  ;;  %v1830_v36 = vld [vmem:[#allocation2 + $0x218] sm:$0xf0] }
  0x91   :  { %887 = vmatpush.bf16.xpose.msra.mxu1 %v1620_v39  ;;  %v1476_v39 = vor.u32 %v1826_v32, %v1473_v34  ;;  %v1480_v42 = vor.u32 %v1830_v36, %v1479_v35  ;;  %v1580_v32 = vor.u32 %v1853_v26, %v1579_v25  ;;  %v1842_v35 = vld [vmem:[#allocation2 + $0x27c] sm:$0xf]  ;;  %v1545_v36 = vld [vmem:[#allocation2 + $0x294] sm:$0xf0] }
  0x92   :  { %900 = vmatpush.bf16.xpose.msra.mxu2 %v1624_v40  ;;  %v1515_v40 = vld [vmem:[#allocation2 + $0x240] sm:$0xf] }
  0x93   :  { %v1516_v44 = vor.u32 %v1838_v41, %v1515_v40  ;;  %v1882_v40 = vld [vmem:[%s2155_s2 + $0x34] sm:$0xf0]  ;;  %v1548_v41 = vor.u32 %v1842_v35, %v1545_v36 }
  0x95   :  { %913 = vmatpush.bf16.xpose.msra.mxu3 %v1628_v54  ;;  %v1453_v54 = vld [vmem:[#allocation2 + $0x1e4] sm:$0xf0] }
  0x98   :  { %875 = vmatpush.bf16.xpose.msra.mxu0 %v1588_v49  ;;  %v1870_v49 = vld [vmem:[#allocation2 + $0x35c] sm:$0xf] }
  0x99   :  { %888 = vmatpush.bf16.xpose.msra.mxu1 %v1592_v52  ;;  %v1874_v52 = vld [vmem:[#allocation2 + $0x378] sm:$0xf0] }
  0x9a   :  { %901 = vmatpush.bf16.xpose.msra.mxu2 %v1596_v53  ;;  %v1820_v53 = vld [vmem:[#allocation2 + $0x1cc] sm:$0xf]  ;;  %v1664_v62 = vor.u32 %v1874_v52, %v1663_v51  ;;  %v1683_v51 = vld [vmem:[%s2155_s2 + $0x20] sm:$0xf]  ;;  %v1880_v52 = vld [vmem:[%s2155_s2 + $0x24] sm:$0xf0] }
  0x9b   :  { %v1456_v63 = vor.u32 %v1820_v53, %v1453_v54  ;;  %v1520_v53 = vor.u32 %v1835_v46, %v1517_v47  ;;  %v1685_v46 = vld [vmem:[%s2155_s2 + $0x28] sm:$0xf0] }
  0x9d   :  { %914 = vmatpush.bf16.xpose.msra.mxu3 %v1600_v2  ;;  %v1863_v2 = vld [vmem:[#allocation2 + $0x324] sm:$0xf] }
  0x9e   :  { %v1632_v13 = vor.u32 %v1863_v2, %v1629_v5 }
  0xa0   :  { %876 = vmatpush.bf16.xpose.msra.mxu0 %v1560_v61  ;;  %v1660_v61 = vor.u32 %v1870_v49, %v1657_v50  ;;  %v1523_v49 = vld [vmem:[#allocation2 + $0x248] sm:$0xf]  ;;  %v1839_v50 = vld [vmem:[#allocation2 + $0x260] sm:$0xf0] }
  0xa1   :  { %889 = vmatpush.bf16.xpose.msra.mxu1 %v1564_v0  ;;  %v1724_v0 = vor.u32 %v1890_v57, %v1723_v55  ;;  %v1524_v54 = vor.u32 %v1839_v50, %v1523_v49  ;;  %v1677_v49 = vld [vmem:[%s2155_s2 + $0x18] sm:$0xf0] }
  0xa2   :  { %902 = vmatpush.bf16.xpose.msra.mxu2 %v1568_v1  ;;  %v1488_v1 = vor.u32 %v1831_v59, %v1487_v58  ;;  %v1828_v59 = vld [vmem:[#allocation2 + $0x20c] sm:$0xf] }
  0xa5   :  { %915 = vmatpush.bf16.xpose.msra.mxu3 %v1572_v17  ;;  %v1856_v17 = vld [vmem:[#allocation2 + $0x2ec] sm:$0xf] }
  0xa6   :  { %v1604_v22 = vor.u32 %v1856_v17, %v1601_v18  ;;  %v1889_v17 = vld [vmem:[%s2155_s2 + $0x74] sm:$0xf]  ;;  %v1725_v18 = vld [vmem:[%s2155_s2 + $0x78] sm:$0xf0] }
  0xa8   :  { %877 = vmatpush.bf16.xpose.msra.mxu0 %v1532_v12  ;;  %v1824_v12 = vld [vmem:[#allocation2 + $0x1e8] sm:$0xf0] }
  0xa9   :  { %890 = vmatpush.bf16.xpose.msra.mxu1 %v1536_v14  ;;  %v1716_v14 = vor.u32 %v1888_v10, %v1715_v8  ;;  %v1461_v8 = vld [vmem:[#allocation2 + $0x1ec] sm:$0xf0]  ;;  %v1467_v10 = vld [vmem:[#allocation2 + $0x1d8] sm:$0xf] }
  0xaa   :  { %903 = vmatpush.bf16.xpose.msra.mxu2 %v1540_v15  ;;  %v1460_v15 = vor.u32 %v1824_v12, %v1459_v11  ;;  %v1825_v11 = vld [vmem:[#allocation2 + $0x1f0] sm:$0xf0]  ;;  %v1667_v12 = vld [vmem:[%s2155_s2] sm:$0xf] }
  0xad   :  { %916 = vmatpush.bf16.xpose.msra.mxu3 %v1544_v31 }
  0xb0   :  { %878 = vmatpush.bf16.xpose.msra.mxu0 %v1504_v24  ;;  %v1573_v24 = vld [vmem:[#allocation2 + $0x2cc] sm:$0xf0] }
  0xb1   :  { %891 = vmatpush.bf16.xpose.msra.mxu1 %v1508_v27  ;;  %v1699_v27 = vld [vmem:[%s2155_s2 + $0x40] sm:$0xf] }
  0xb2   :  { %904 = vmatpush.bf16.xpose.msra.mxu2 %v1512_v30  ;;  %v1884_v30 = vld [vmem:[%s2155_s2 + $0x44] sm:$0xf0] }
  0xb3   :  { %v1700_v34 = vor.u32 %v1884_v30, %v1699_v27  ;;  %v1701_v30 = vld [vmem:[%s2155_s2 + $0x48] sm:$0xf0] }
  0xb5   :  { %917 = vmatpush.bf16.xpose.msra.mxu3 %v1516_v44 }
  0xb8   :  { %879 = vmatpush.bf16.xpose.msra.mxu0 %v1476_v39  ;;  %v1691_v39 = vld [vmem:[%s2155_s2 + $0x30] sm:$0xf] }
  0xb9   :  { %892 = vmatpush.bf16.xpose.msra.mxu1 %v1480_v42  ;;  %v1692_v44 = vor.u32 %v1882_v40, %v1691_v39 }
  0xba   :  { %905 = vmatpush.bf16.xpose.msra.mxu2 %v1484_v43 }
  0xbd   :  { %918 = vmatpush.bf16.xpose.msra.mxu3 %v1488_v1 }
  0xc0   :  { %880 = vmatpush.bf16.xpose.msra.mxu0 %v1448_v56  ;;  %v1684_v56 = vor.u32 %v1880_v52, %v1683_v51 }
  0xc1   :  { %893 = vmatpush.bf16.xpose.msra.mxu1 %v1452_v60  ;;  %v1489_v60 = vld [vmem:[#allocation2 + $0x224] sm:$0xf0] }
  0xc2   :  { %906 = vmatpush.bf16.xpose.msra.mxu2 %v1456_v63  ;;  %v1675_v63 = vld [vmem:[%s2155_s2 + $0x10] sm:$0xf]  ;;  %v1492_v1 = vor.u32 %v1828_v59, %v1489_v60  ;;  %v1875_v59 = vld [vmem:[%s2155_s2 + $0x4] sm:$0xf]  ;;  %v1669_v60 = vld [vmem:[%s2155_s2 + $0x8] sm:$0xf0] }
  0xc4   :  { %v2044_v37 = vpop.f32.mrf.mxu0 }
  0xc5   :  { %919 = vmatpush.bf16.xpose.msra.mxu3 %v1460_v15  ;;  %v791_v43 = vpop.f32.mrf.mxu1 }
  0xc7   :  { %881 = vmatmul.bf16.vlgmr.msra.gmra.mxu0 %v1994_v9  ;;  %v1886_v9 = vld [vmem:[%s2155_s2 + $0x54] sm:$0xf0] }
  0xc8   :  { %925 = vmatpush.bf16.xpose.msrb.mxu0 %v1660_v61  ;;  %894 = vmatmul.bf16.vlgmr.msra.gmra.mxu1 %v1990_v4  ;;  %v1608_v4 = vor.u32 %v1860_v20, %v1607_v19  ;;  %v1708_v23 = vor.u32 %v1886_v9, %v1707_v21  ;;  %v1495_v61 = vld [vmem:[#allocation2 + $0x210] sm:$0xf]  ;;  %v1728_v19 = vor.u32 %v1889_v17, %v1725_v18  ;;  %v1887_v20 = vld [vmem:[%s2155_s2 + $0x64] sm:$0xf]  ;;  %v1717_v21 = vld [vmem:[%s2155_s2 + $0x68] sm:$0xf0] }
  0xc9   :  { %938 = vmatpush.bf16.xpose.msrb.mxu1 %v1664_v62  ;;  %907 = vmatmul.bf16.vlgmr.msra.gmra.mxu2 %v1997_v16  ;;  %v1849_v16 = vld [vmem:[#allocation2 + $0x2b4] sm:$0xf]  ;;  %v1832_v62 = vld [vmem:[#allocation2 + $0x228] sm:$0xf0]  ;;  %v1720_v9 = vor.u32 %v1887_v20, %v1717_v21 }
  0xca   :  { %1051 = vmatpush.bf16.xpose.msrb.mxu2 %v1724_v0  ;;  %v1576_v31 = vor.u32 %v1849_v16, %v1573_v24  ;;  %v1878_v0 = vld [vmem:[%s2155_s2 + $0x14] sm:$0xf0]  ;;  %v1496_v2 = vor.u32 %v1832_v62, %v1495_v61  ;;  %v1709_v16 = vld [vmem:[%s2155_s2 + $0x58] sm:$0xf0]  ;;  %v1672_v61 = vor.u32 %v1875_v59, %v1669_v60  ;;  %v1893_v20 = vld [vmem:[%s2156_s3 + $0x10] sm:$0xff] }
  0xcb   :  { %v1676_v5 = vor.u32 %v1878_v0, %v1675_v63  ;;  %v1892_v21 = vld [vmem:[%s2156_s3 + $0x8] sm:$0xff] }
  0xcc   :  { %920 = vmatmul.bf16.vlgmr.msra.gmra.mxu3 %v2006_v28  ;;  %v1551_v28 = vld [vmem:[#allocation2 + $0x280] sm:$0xf]  ;;  %v804_v45 = vpop.f32.mrf.mxu2  ;;  %v780_v48 = vpop.f32.mrf.mxu0 }
  0xcd   :  { %v1552_v42 = vor.u32 %v1846_v38, %v1551_v28  ;;  %v793_v55 = vpop.f32.mrf.mxu1  ;;  %1064 = vmatpush.bf16.xpose.msrb.mxu3 %v1728_v19  ;;  %v1877_v48 = vld [vmem:[%s2155_s2 + $0x14] sm:$0xf]  ;;  %v1894_v19 = vld [vmem:[%s2156_s3 + $0x18] sm:$0xff] }
  0xce   :  { %v1680_v50 = vor.u32 %v1877_v48, %v1677_v49 }
  0xcf   :  { %v817_v57 = vpop.f32.mrf.mxu3 }
  0xd0   :  { %926 = vmatpush.bf16.xpose.msrb.mxu0 %v1632_v13  ;;  %v1876_v13 = vld [vmem:[%s2155_s2 + $0x4] sm:$0xf0] }
  0xd1   :  { %939 = vmatpush.bf16.xpose.msrb.mxu1 %v1636_v3  ;;  %v1464_v3 = vor.u32 %v1821_v7, %v1461_v8  ;;  %v1668_v15 = vor.u32 %v1876_v13, %v1667_v12 }
  0xd2   :  { %1052 = vmatpush.bf16.xpose.msrb.mxu2 %v1716_v14  ;;  %v1468_v14 = vor.u32 %v1825_v11, %v1467_v10  ;;  %v1898_v11 = vld [vmem:[%s2156_s3 + $0x38] sm:$0xff] }
  0xd4   :  { %v806_v58 = vpop.f32.mrf.mxu2 }
  0xd5   :  { %1065 = vmatpush.bf16.xpose.msrb.mxu3 %v1720_v9  ;;  %v1891_v9 = vld [vmem:[%s2156_s3] sm:$0xff] }
  0xd7   :  { %v819_v6 = vpop.f32.mrf.mxu3 }
  0xd8   :  { %927 = vmatpush.bf16.xpose.msrb.mxu0 %v1604_v22  ;;  %v792_v22 = vadd.f32 %v791_v43, %v2044_v37  ;;  %v1693_v43 = vld [vmem:[%s2155_s2 + $0x38] sm:$0xf0] }
  0xd9   :  { %940 = vmatpush.bf16.xpose.msrb.mxu1 %v1608_v4 }
  0xda   :  { %1053 = vmatpush.bf16.xpose.msrb.mxu2 %v1708_v23  ;;  %v805_v4 = vadd.f32 %v804_v45, %v792_v22  ;;  %v1885_v23 = vld [vmem:[%s2155_s2 + $0x54] sm:$0xf]  ;;  %v1879_v45 = vld [vmem:[%s2155_s2 + $0x24] sm:$0xf] }
  0xdb   :  { %v1712_v24 = vor.u32 %v1885_v23, %v1709_v16  ;;  %v1688_v47 = vor.u32 %v1879_v45, %v1685_v46  ;;  %v1947_v46 = vmov 0  }
  0xdc   :  { %v818_v25 = vadd.f32 %v817_v57, %v805_v4  ;;  %1904 = vset.pattern.permute.xlu1 %v1947_v46  ;;  %1905 = vset.pattern.permute.xlu0 %v1947_v46 }
  0xdd   :  { %1066 = vmatpush.bf16.xpose.msrb.mxu3 %v1712_v24 }
  0xe0   :  { %928 = vmatpush.bf16.xpose.msrb.mxu0 %v1576_v31 }
  0xe1   :  { %941 = vmatpush.bf16.xpose.msrb.mxu1 %v1580_v32 }
  0xe2   :  { %1054 = vmatpush.bf16.xpose.msrb.mxu2 %v1700_v34 }
  0xe8   :  { %929 = vmatpush.bf16.xpose.msrb.mxu0 %v1548_v41 }
  0xe9   :  { %942 = vmatpush.bf16.xpose.msrb.mxu1 %v1552_v42  ;;  %v1881_v42 = vld [vmem:[%s2155_s2 + $0x34] sm:$0xf] }
  0xea   :  { %1055 = vmatpush.bf16.xpose.msrb.mxu2 %v1692_v44  ;;  %v1696_v44 = vor.u32 %v1881_v42, %v1693_v43 }
  0xf0   :  { %930 = vmatpush.bf16.xpose.msrb.mxu0 %v1520_v53 }
  0xf1   :  { %943 = vmatpush.bf16.xpose.msrb.mxu1 %v1524_v54 }
  0xf2   :  { %1056 = vmatpush.bf16.xpose.msrb.mxu2 %v1684_v56 }
  0xf8   :  { %931 = vmatpush.bf16.xpose.msrb.mxu0 %v1492_v1 }
  0xf9   :  { %944 = vmatpush.bf16.xpose.msrb.mxu1 %v1496_v2 }
  0xfa   :  { %1057 = vmatpush.bf16.xpose.msrb.mxu2 %v1676_v5 }
 0x100   :  { %932 = vmatpush.bf16.xpose.msrb.mxu0 %v1464_v3  ;;  %v1897_v3 = vld [vmem:[%s2156_s3 + $0x30] sm:$0xff] }
 0x101   :  { %945 = vmatpush.bf16.xpose.msrb.mxu1 %v1468_v14  ;;  %v1896_v14 = vld [vmem:[%s2156_s3 + $0x28] sm:$0xff] }
 0x102   :  { %1058 = vmatpush.bf16.xpose.msrb.mxu2 %v1668_v15  ;;  %v1895_v15 = vld [vmem:[%s2156_s3 + $0x20] sm:$0xff] }
 0x104   :  { %v830_v26 = vpop.f32.mrf.mxu0 }
 0x105   :  { %v843_v27 = vpop.f32.mrf.mxu1 }
 0x107   :  { %933 = vmatmul.bf16.vlgmr.msrb.gmra.mxu0 %v2008_v29  ;;  %v831_v29 = vadd.f32 %v830_v26, %v818_v25 }
 0x108   :  { %946 = vmatmul.bf16.vlgmr.msrb.gmra.mxu1 %v2010_v33  ;;  %v1883_v33 = vld [vmem:[%s2155_s2 + $0x44] sm:$0xf]  ;;  %1161 = vmatpush.bf16.xpose.msra.mxu0 %v1898_v11 }
 0x109   :  { %v1704_v31 = vor.u32 %v1883_v33, %v1701_v30  ;;  %v844_v32 = vadd.f32 %v843_v27, %v831_v29 }
 0x10b   :  { %1067 = vmatpush.bf16.xpose.msrb.mxu3 %v1704_v31 }
 0x10c   :  { %v856_v34 = vpop.f32.mrf.mxu2  ;;  %v832_v36 = vpop.f32.mrf.mxu0 }
 0x10d   :  { %v857_v35 = vadd.f32 %v856_v34, %v844_v32  ;;  %v845_v37 = vpop.f32.mrf.mxu1 }
 0x10f   :  { %v951_v28 = vmax.f32 %v857_v35, 0.0  ;;  %v869_v40 = vpop.f32.mrf.mxu3 }
 0x110   :  { %1162 = vmatpush.bf16.xpose.msra.mxu0 %v1897_v3 }
 0x111   :  { %v953_v38 = vpack.c.bf16 %v951_v28, %v951_v28  ;;  %v1174_v28 = vlaneseq }
 0x113   :  { %1059 = vmatmul.bf16.vlgmr.msrb.gmra.mxu2 %v953_v38  ;;  %1068 = vmatpush.bf16.xpose.msrb.mxu3 %v1696_v44  ;;  %v1175_v38 = vand.u32 127, %v1174_v28 }
 0x114   :  { %v858_v39 = vpop.f32.mrf.mxu2 }
 0x115   :  { %vm1176_vm4 = vcmp.lt.s32.totalorder %v1175_v38, 10  ;;  %vm1209_vm6 = vcmp.eq.s32.totalorder %v1175_v38, 10 }
 0x117   :  { %v871_v41 = vpop.f32.mrf.mxu3 }
 0x118   :  { %1163 = vmatpush.bf16.xpose.msra.mxu0 %v1896_v14 }
 0x11b   :  { %1069 = vmatpush.bf16.xpose.msrb.mxu3 %v1688_v47 }
 0x120   :  { %1164 = vmatpush.bf16.xpose.msra.mxu0 %v1895_v15 }
 0x123   :  { %1070 = vmatpush.bf16.xpose.msrb.mxu3 %v1680_v50  ;;  %v1198_v50 = vld [vmem:[%s2157_s4] sm:$0xff] }
 0x128   :  { %1165 = vmatpush.bf16.xpose.msra.mxu0 %v1894_v19 }
 0x12b   :  { %1071 = vmatpush.bf16.xpose.msrb.mxu3 %v1672_v61 }
 0x130   :  { %1166 = vmatpush.bf16.xpose.msra.mxu0 %v1893_v20 }
 0x138   :  { %1167 = vmatpush.bf16.xpose.msra.mxu0 %v1892_v21 }
 0x140   :  { %1168 = vmatpush.bf16.xpose.msra.mxu0 %v1891_v9 }
 0x144   :  { %v882_v51 = vpop.f32.mrf.mxu0 }
 0x145   :  { %v895_v52 = vpop.f32.mrf.mxu1  ;;  %v883_v62 = vadd.f32 %v882_v51, %v869_v40 }
 0x147   :  { %v896_v63 = vadd.f32 %v895_v52, %v883_v62 }
 0x14c   :  { %v884_v53 = vpop.f32.mrf.mxu0  ;;  %v908_v54 = vpop.f32.mrf.mxu2 }
 0x14d   :  { %v897_v55 = vpop.f32.mrf.mxu1  ;;  %v909_v0 = vadd.f32 %v908_v54, %v896_v63 }
 0x14f   :  { %v921_v57 = vpop.f32.mrf.mxu3 }
 0x150   :  { %v922_v1 = vadd.f32 %v921_v57, %v909_v0  ;;  %v1948_v57 = vmov 0.0  }
 0x154   :  { %v910_v56 = vpop.f32.mrf.mxu2 }
 0x157   :  { %v923_v58 = vpop.f32.mrf.mxu3 }
 0x184   :  { %v934_v2 = vpop.f32.mrf.mxu0 }
 0x185   :  { %v935_v5 = vadd.f32 %v934_v2, %v922_v1  ;;  %v947_v6 = vpop.f32.mrf.mxu1 }
 0x187   :  { %v948_v7 = vadd.f32 %v947_v6, %v935_v5 }
 0x189   :  { %v952_v8 = vmax.f32 %v948_v7, 0.0 }
 0x18b   :  { %v954_v10 = vpack.c.bf16 %v952_v8, %v952_v8 }
 0x18c   :  { %v936_v12 = vpop.f32.mrf.mxu0 }
 0x18d   :  { %v949_v13 = vpop.f32.mrf.mxu1  ;;  %1072 = vmatmul.bf16.vlgmr.msrb.gmra.mxu3 %v954_v10 }
 0x196   :  { %v1060_v17 = vpop.f32.mrf.mxu2 }
 0x19e   :  { %v1062_v18 = vpop.f32.mrf.mxu2 }
 0x210   :  { %v1073_v22 = vpop.f32.mrf.mxu3 }
 0x211   :  { %v1074_v4 = vadd.f32 %v1073_v22, %v1060_v17 }
 0x213   :  { %v1729_v23 = vmul.f32 -1.442695, %v1074_v4 }
 0x215   :  { %1906 = vpow2.f32 %v1729_v23 }
 0x218   :  { %v1075_v16 = vpop.f32.mrf.mxu3 }
 0x21b   :  { %v1907_v24 = vpop.eup %1906 }
 0x21c   :  { %v1080_v25 = vadd.f32 1.0, %v1907_v24 }
 0x21e   :  { %1908 = vrcp.f32 %v1080_v25  ;;  %v1092_v33 = vand.u32 2147483648, %v1080_v25  ;;  %v1090_v31 = vand.u32 2147483647, %v1080_v25  ;;  %vm1086_vm1 = vweird.f32 %v1080_v25 }
 0x220   :  { %v1093_v34 = vor.u32 1.1754944e-38, %v1092_v33  ;;  %vm1091_vm3 = vcmp.eq.f32.partialorder %v1090_v31, 8.507059e+37 }
 0x224   :  { %v1909_v26 = vpop.eup %1908 }
 0x225   :  { %v1082_v27 = vmul.f32 %v1909_v26, %v1080_v25  ;;  %vm1087_vm0 = vweird.f32 %v1909_v26 }
 0x226   :  { %vm1088_vm2 = vmor %vm1086_vm1, %vm1087_vm0 }
 0x227   :  { %v1083_v29 = vsub.f32 1.0, %v1082_v27 }
 0x229   :  { %v1084_v30 = vmul.f32 %v1909_v26, %v1083_v29 }
 0x22b   :  { %v1085_v32 = vadd.f32 %v1909_v26, %v1084_v30 }
 0x22d   :  { %v1089_v35 = vsel %vm1088_vm2, %v1909_v26, %v1085_v32 }
 0x22e   :  { %v1094_v36 = vsel %vm1091_vm3, %v1093_v34, %v1089_v35 }
 0x22f   :  { %v1096_v37 = vpack.c.bf16 %v1094_v36, %v1094_v36 }
 0x231   :  { %1169 = vmatmul.bf16.vlgmr.msra.gmra.mxu0 %v1096_v37 }
 0x2ae   :  { %v1170_v39 = vpop.f32.mrf.mxu0 }
 0x2af   :  { %v1177_v40 = vsel %vm1176_vm4, %v1170_v39, -1e+30 }
 0x2b0   :  { %1178 = vmax.xlane.f32.xlu0 %v1177_v40 }
 0x2b6   :  { %v1172_v41 = vpop.f32.mrf.mxu0 }
 0x323   :  { %v1179_v42 = vpop.xlane.xlu0 %1178 }
 0x324   :  { %v1180_v43 = vsub.f32 %v1177_v40, %v1179_v42 }
 0x326   :  { %v1181_v44 = vmul.f32 1.442695, %v1180_v43 }
 0x328   :  { %1910 = vpow2.f32 %v1181_v44 }
 0x32e   :  { %v1911_v45 = vpop.eup %1910 }
 0x32f   :  { %1183 = vadd.xlane.f32.xlu0 %v1911_v45 }
 0x3a2   :  { %v1184_v47 = vpop.xlane.xlu0 %1183 }
 0x3a3   :  { %1912 = vrcp.f32 %v1184_v47 }
 0x3a9   :  { %v1913_v48 = vpop.eup %1912 }
 0x3aa   :  { %v1186_v49 = vmul.f32 %v1913_v48, %v1911_v45 }
 0x3ac   :  { %1187 = vmax.xlane.f32.xlu1 %v1186_v49 }
 0x3c5   :  { %1200 = vperm.xlu1 %1904, %v1198_v50  }
 0x41f   :  { %v1188_v51 = vpop.xlane.xlu1 %1187 }
 0x420   :  { %v1189_v52 = vsub.f32 %v1186_v49, %v1188_v51 }
 0x422   :  { %v1190_v53 = vmul.f32 1.442695, %v1189_v52 }
 0x424   :  { %1914 = vpow2.f32 %v1190_v53 }
 0x42a   :  { %v1915_v54 = vpop.eup %1914 }
 0x42b   :  { %v1192_v55 = vsel %vm1176_vm4, %v1915_v54, 0.0 }
 0x42c   :  { %1193 = vadd.xlane.f32.xlu2 %v1192_v55 }
 0x437   :  { %v1201_v56 = vpop.permute.xlu1 %1200 }
 0x438   :  { %vm1202_vm5 = vcmp.eq.s32.totalorder %v1175_v38, %v1201_v56 }
 0x439   :  { %v1762_v58 = vsel %vm1202_vm5, 1.0, %v1948_v57 }
 0x43a   :  { %v1205_v59 = vmul.f32 %v1762_v58, %v1186_v49 }
 0x43c   :  { %1206 = vadd.xlane.f32.xlu2 %v1205_v59 }
 0x49f   :  { %v1194_v60 = vpop.xlane.xlu2 %1193 }
 0x4a0   :  { %1916 = vlog2.f32 %v1194_v60 }
 0x4a6   :  { %v1917_v61 = vpop.eup %1916 }
 0x4a7   :  { %v1196_v62 = vmul.f32 0.6931472, %v1917_v61 }
 0x4a9   :  { %v1197_v63 = vadd.f32 %v1196_v62, %v1188_v51 }
 0x4af   :  { %v1207_v0 = vpop.xlane.xlu2 %1206 }
 0x4b0   :  { %v1208_v1 = vsub.f32 %v1197_v63, %v1207_v0 }
 0x4b2   :  { %v1210_v2 = vsel %vm1209_vm6, %v1208_v1, %v1170_v39 }
 0x4b3   :  { %1211 = vst [vmem:[%s2158_s5] sm:$0xff] %v1210_v2 }
 0x4b4   :  { %1216 = vsyncpa [#allocation3], 1 }

</bundles_post_ra>
